<compile_context>
chip_gen: v7x
topology: tpu7x:2x2x1
jax: 0.10.0
libtpu: 0.0.40
codegen_flags: <defaults>
</compile_context>

<pallas_src>
import functools

import jax
import jax.numpy as jnp
from jax.experimental import pallas as pl
from jax.experimental.pallas import tpu as pltpu

BN_EPS = 1e-5


def _round_up(v, m):
    return ((v + m - 1) // m) * m


def _pick_block_hw(hw, k_pad, cout, n_batch, block_hw=None):
    """Spatial (lane) tile size: multiple of 128, sized from a VMEM budget."""
    if block_hw is None:
        # Double-buffered f32 patch tile + double-buffered f32 out tile +
        # in-kernel f32 temporaries, per lane column.
        bytes_per_col = 2 * k_pad * 4 + 2 * cout * 4 + 4 * cout * 4
        budget = 24 * 1024 * 1024   # safe on v5e/v6e (128 MiB) and v7x (64 MiB/TC)
        bhw = budget // max(bytes_per_col, 1)
        bhw = min(bhw, 4096)        # HBM roofline saturates well before this
    else:
        bhw = block_hw
    bhw = min(bhw, _round_up(hw, 128))
    if n_batch == 1 and hw > 256:
        # keep >= 2 grid steps so both v7x TensorCores get work
        bhw = min(bhw, max(128, _round_up(-(-hw // 2), 128)))
    return max(128, (bhw // 128) * 128)


def _stats_kernel(w_ref, p_ref, sum_ref, m2_ref, *, hw, bhw):
    """Pass 1: y = W @ P-tile (recomputed in pass 2); per-tile BN statistics."""
    t = pl.program_id(1)
    y = jnp.dot(w_ref[...], p_ref[...].astype(jnp.bfloat16),
                preferred_element_type=jnp.float32)            # (Cout, bhw) f32
    # Valid-column mask: only the last spatial tile may contain zero padding.
    col = jax.lax.broadcasted_iota(jnp.int32, (1, bhw), 1) + t * bhw
    valid = (col < hw).astype(jnp.float32)                      # (1, bhw)
    cnt = jnp.minimum(hw - t * bhw, bhw).astype(jnp.float32)    # scalar, >= 1
    s = jnp.sum(y, axis=1, keepdims=True)                       # padded cols are 0
    mean_t = s / cnt
    d = (y - mean_t) * valid
    m2 = jnp.sum(d * d, axis=1, keepdims=True)                  # centered M2
    sum_ref[...] = s
    m2_ref[...] = m2


def _apply_kernel(w_ref, p_ref, scale_ref, shift_ref, o_ref):
    """Pass 2: recompute y = W @ P-tile, apply folded BN affine (lane-dense)."""
    y = jnp.dot(w_ref[...], p_ref[...].astype(jnp.bfloat16),
                preferred_element_type=jnp.float32)
    o_ref[...] = y * scale_ref[:, 0:1] + shift_ref[:, 0:1]


def linear_block_forward(x, weight, gamma, beta, *, stride=(1, 1),
                         padding=(0, 0), groups=1, block_hw=None):
    """x: (N, Cin, H, W) f32; weight: (Cout, Cin, kh, kw) -> (N, Cout, Ho, Wo)."""
    # TODO(synk): grouped conv (groups > 1, e.g. the depthwise GDC usage of
    # Linear_block) is not implemented.
    assert groups == 1, "only groups=1 is supported"
    N, Cin, H, W = x.shape
    Cout, Cin_w, kh, kw = weight.shape
    assert Cin_w == Cin
    sh, sw = stride
    ph, pw = padding
    Ho = (H + 2 * ph - kh) // sh + 1
    Wo = (W + 2 * pw - kw) // sw + 1
    HW = Ho * Wo
    K = Cin * kh * kw
    M = N * HW

    # ---- per-image patch matrix p3: (N, K, Ho*Wo); no transposes ----
    if kh == 1 and kw == 1:
        xp = jnp.pad(x, ((0, 0), (0, 0), (ph, ph), (pw, pw))) if (ph or pw) else x
        xs = xp[:, :, ::sh, ::sw] if (sh != 1 or sw != 1) else xp
        p3 = xs.reshape(N, Cin, HW)        # free reshape in the default config
    else:
        # TODO(synk): k>1 still materializes kh*kw shifted copies (im2col);
        # in-kernel tap accumulation from one padded x slab would cut HBM
        # traffic ~2x for 3x3 and remove this intermediate.
        xp = jnp.pad(x, ((0, 0), (0, 0), (ph, ph), (pw, pw)))
        taps = [xp[:, :, i:i + sh * Ho:sh, j:j + sw * Wo:sw]
                for i in range(kh) for j in range(kw)]
        p3 = jnp.stack(taps, axis=2).reshape(N, K, HW)   # K = c*kh*kw + i*kw + j

    # ---- TPU-friendly padding (no copies when Cin % 8 == 0 and HW % bhw == 0) ----
    K_pad = _round_up(K, 8)
    bhw = _pick_block_hw(HW, K_pad, Cout, N, block_hw)
    HW_pad = _round_up(HW, bhw)
    T = HW_pad // bhw
    if K_pad != K or HW_pad != HW:
        p3 = jnp.pad(p3, ((0, 0), (0, K_pad - K), (0, HW_pad - HW)))
    w2 = weight.reshape(Cout, K)
    if K_pad != K:
        w2 = jnp.pad(w2, ((0, 0), (0, K_pad - K)))
    w2 = w2.astype(jnp.bfloat16)

    grid = (N, T)
    dimsem = ("parallel", "parallel")
    vmem_limit = 32 * 1024 * 1024

    # ---- pass 1: matmul + per-tile per-channel sum / centered sum-of-squares ----
    cost1 = pl.CostEstimate(
        flops=2 * N * HW_pad * K_pad * Cout,
        transcendentals=0,
        bytes_accessed=(p3.size * p3.dtype.itemsize + w2.size * 2
                        + 2 * N * T * Cout * 4))
    sum_nt, m2_nt = pl.pallas_call(
        functools.partial(_stats_kernel, hw=HW, bhw=bhw),
        out_shape=(jax.ShapeDtypeStruct((N, T, Cout, 1), jnp.float32),
                   jax.ShapeDtypeStruct((N, T, Cout, 1), jnp.float32)),
        grid_spec=pltpu.PrefetchScalarGridSpec(
            num_scalar_prefetch=0,
            grid=grid,
            in_specs=[pl.BlockSpec((Cout, K_pad), lambda n, t: (0, 0)),
                      pl.BlockSpec((None, K_pad, bhw), lambda n, t: (n, 0, t))],
            out_specs=(pl.BlockSpec((None, None, Cout, 1), lambda n, t: (n, t, 0, 0)),
                       pl.BlockSpec((None, None, Cout, 1), lambda n, t: (n, t, 0, 0)))),
        compiler_params=pltpu.CompilerParams(
            dimension_semantics=dimsem, vmem_limit_bytes=vmem_limit),
        cost_estimate=cost1,
    )(w2, p3)

    # ---- tiny cross-tile reduce (Chan's parallel-Welford merge) + affine fold ----
    sums = sum_nt[..., 0]                       # (N, T, Cout)
    m2s = m2_nt[..., 0]
    counts = jnp.array([min(bhw, HW - t * bhw) for t in range(T)], jnp.float32)
    mean = jnp.sum(sums, axis=(0, 1)) / M       # (Cout,)
    mean_t = sums / counts[None, :, None]
    m2 = jnp.sum(m2s, axis=(0, 1)) + jnp.sum(
        counts[None, :, None] * (mean_t - mean[None, None, :]) ** 2, axis=(0, 1))
    var = jnp.maximum(m2 / M, 0.0)              # biased (train-mode) variance
    inv = jax.lax.rsqrt(var + BN_EPS)
    scale = gamma.astype(jnp.float32) * inv
    shift = beta.astype(jnp.float32) - mean * scale
    scale_b = jnp.broadcast_to(scale[:, None], (Cout, 128))   # unmasked lane loads
    shift_b = jnp.broadcast_to(shift[:, None], (Cout, 128))

    # ---- pass 2: recompute matmul (K is tiny; kernel is HBM-bound) + apply BN ----
    # TODO(synk): for very large K (K_pad >> 2*Cout) a bf16-materialized
    # intermediate would beat recomputation; irrelevant for the default 1x1 conv.
    cost2 = pl.CostEstimate(
        flops=2 * N * HW_pad * K_pad * Cout + 2 * N * HW_pad * Cout,
        transcendentals=0,
        bytes_accessed=(p3.size * p3.dtype.itemsize + w2.size * 2
                        + 2 * Cout * 128 * 4 + N * Cout * HW_pad * 4))
    out3 = pl.pallas_call(
        _apply_kernel,
        out_shape=jax.ShapeDtypeStruct((N, Cout, HW_pad), jnp.float32),
        grid_spec=pltpu.PrefetchScalarGridSpec(
            num_scalar_prefetch=0,
            grid=grid,
            in_specs=[pl.BlockSpec((Cout, K_pad), lambda n, t: (0, 0)),
                      pl.BlockSpec((None, K_pad, bhw), lambda n, t: (n, 0, t)),
                      pl.BlockSpec((Cout, 128), lambda n, t: (0, 0)),
                      pl.BlockSpec((Cout, 128), lambda n, t: (0, 0))],
            out_specs=pl.BlockSpec((None, Cout, bhw), lambda n, t: (n, 0, t))),
        compiler_params=pltpu.CompilerParams(
            dimension_semantics=dimsem, vmem_limit_bytes=vmem_limit),
        cost_estimate=cost2,
    )(w2, p3, scale_b, shift_b)

    out3 = out3 if HW_pad == HW else out3[:, :, :HW]
    return out3.reshape(N, Cout, Ho, Wo)        # no transpose: already NCHW


def linear_block_reference(x, weight, gamma, beta, *, stride, padding):
    """Pure-JAX reference matching PyTorch Conv2d(bias=False) + BatchNorm2d(train)."""
    y = jax.lax.conv_general_dilated(
        x, weight,
        window_strides=stride,
        padding=[(padding[0], padding[0]), (padding[1], padding[1])],
        dimension_numbers=("NCHW", "OIHW", "NCHW"),
        precision=jax.lax.Precision.HIGHEST)
    mean = y.mean(axis=(0, 2, 3), keepdims=True)
    var = ((y - mean) ** 2).mean(axis=(0, 2, 3), keepdims=True)
    yn = (y - mean) / jnp.sqrt(var + BN_EPS)
    return yn * gamma[None, :, None, None] + beta[None, :, None, None]


if __name__ == "__main__":
    key = jax.random.PRNGKey(0)
    k1, k2, k3 = jax.random.split(key, 3)

    N, Cin, H, W, Cout = 2, 4, 16, 16, 8
    x = jax.random.normal(k1, (N, Cin, H, W), dtype=jnp.float32)
    gamma = jnp.ones((Cout,), jnp.float32)     # PyTorch BN default init
    beta = jnp.zeros((Cout,), jnp.float32)

    # Tolerance reflects bf16 MXU inputs (stats / normalization stay in f32).
    ATOL = RTOL = 3e-2

    # Config A: Linear_block defaults -- 1x1 pointwise conv (free input reshape).
    # block_hw=128 -> 2 spatial tiles per image, exercising the cross-tile
    # Welford merge of the batch statistics.
    w_a = 0.1 * jax.random.normal(k2, (Cout, Cin, 1, 1), dtype=jnp.float32)
    fwd_a = jax.jit(functools.partial(linear_block_forward,
                                      stride=(1, 1), padding=(0, 0), block_hw=128))
    out_a = fwd_a(x, w_a, gamma, beta)
    jax.block_until_ready(out_a)
    ref_a = linear_block_reference(x, w_a, gamma, beta, stride=(1, 1), padding=(0, 0))
    assert out_a.shape == ref_a.shape == (N, Cout, H, W), (out_a.shape, ref_a.shape)
    assert jnp.allclose(out_a, ref_a, atol=ATOL, rtol=RTOL), \
        float(jnp.max(jnp.abs(out_a - ref_a)))

    # Config B: 3x3 conv, padding (1,1) -- exercises the general-K (im2col) path
    # and the auto-sized spatial tile.
    w_b = 0.1 * jax.random.normal(k3, (Cout, Cin, 3, 3), dtype=jnp.float32)
    fwd_b = jax.jit(functools.partial(linear_block_forward,
                                      stride=(1, 1), padding=(1, 1)))
    out_b = fwd_b(x, w_b, gamma, beta)
    jax.block_until_ready(out_b)
    ref_b = linear_block_reference(x, w_b, gamma, beta, stride=(1, 1), padding=(1, 1))
    assert out_b.shape == ref_b.shape == (N, Cout, H, W), (out_b.shape, ref_b.shape)
    assert jnp.allclose(out_b, ref_b, atol=ATOL, rtol=RTOL), \
        float(jnp.max(jnp.abs(out_b - ref_b)))

    print("KERNEL_OK")
</pallas_src>

<mosaic_0001>
module attributes {stable_mosaic.version = 11 : i64} {
  func.func @_stats_kernel(%arg0: i32, %arg1: i32, %arg2: memref<8x8xbf16, #tpu.memory_space<vmem>>, %arg3: memref<1x8x128xf32, #tpu.memory_space<vmem>>, %arg4: memref<1x1x8x1xf32, #tpu.memory_space<vmem>>, %arg5: memref<1x1x8x1xf32, #tpu.memory_space<vmem>>) attributes {dimension_semantics = [#tpu.dimension_semantics<parallel>, #tpu.dimension_semantics<parallel>], iteration_bounds = array<i64: 2, 2>, scalar_prefetch = 0 : i64, scratch_operands = 0 : i64, tpu.core_type = #tpu.core_type<tc>, window_params = [{pipeline_mode = #tpu.pipeline_mode<synchronous>, transform_indices = @transform_0, window_bounds = array<i64: 8, 8>}, {transform_indices = @transform_1, window_bounds = array<i64: 1, 8, 128>}, {transform_indices = @transform_2, window_bounds = array<i64: 1, 1, 8, 1>}, {transform_indices = @transform_3, window_bounds = array<i64: 1, 1, 8, 1>}]} {
    %c0 = arith.constant 0 : index
    %c0_0 = arith.constant 0 : index
    %0 = vector.load %arg2[%c0, %c0_0] : memref<8x8xbf16, #tpu.memory_space<vmem>>, vector<8x8xbf16>
    %c0_1 = arith.constant 0 : index
    %c0_2 = arith.constant 0 : index
    %c0_3 = arith.constant 0 : index
    %1 = vector.load %arg3[%c0_1, %c0_2, %c0_3] : memref<1x8x128xf32, #tpu.memory_space<vmem>>, vector<1x8x128xf32>
    %2 = vector.shape_cast %1 : vector<1x8x128xf32> to vector<8x128xf32>
    %3 = arith.truncf %2 : vector<8x128xf32> to vector<8x128xbf16>
    %cst = arith.constant dense<0.000000e+00> : vector<8x128xf32>
    %4 = tpu.matmul %0, %3, %cst {dimension_numbers = #tpu.dot_dimension_numbers<[1], [0], [0], [1], [0, 0, 1, 1], [], []>} : vector<8x8xbf16>, vector<8x128xbf16>, vector<8x128xf32> -> vector<8x128xf32>
    %5 = tpu.iota {dimensions = array<i32: 1>} : vector<1x128xi32>
    %c128_i32 = arith.constant 128 : i32
    %6 = arith.muli %arg1, %c128_i32 : i32
    %7 = vector.broadcast %6 : i32 to vector<1x128xi32>
    %8 = arith.addi %5, %7 : vector<1x128xi32>
    %c256_i32 = arith.constant 256 : i32
    %9 = vector.broadcast %c256_i32 : i32 to vector<1x128xi32>
    %10 = arith.cmpi slt, %8, %9 : vector<1x128xi32>
    %11 = arith.extui %10 : vector<1x128xi1> to vector<1x128xi32>
    %12 = arith.sitofp %11 : vector<1x128xi32> to vector<1x128xf32>
    %c128_i32_4 = arith.constant 128 : i32
    %13 = arith.muli %arg1, %c128_i32_4 : i32
    %c256_i32_5 = arith.constant 256 : i32
    %14 = arith.subi %c256_i32_5, %13 : i32
    %c128_i32_6 = arith.constant 128 : i32
    %15 = arith.minsi %14, %c128_i32_6 : i32
    %16 = arith.sitofp %15 : i32 to f32
    %cst_7 = arith.constant dense<0.000000e+00> : vector<8xf32>
    %17 = vector.multi_reduction <add>, %4, %cst_7 [1] : vector<8x128xf32> to vector<8xf32>
    %18 = vector.shape_cast %17 : vector<8xf32> to vector<8x1xf32>
    %19 = vector.broadcast %16 : f32 to vector<8x1xf32>
    %20 = arith.divf %18, %19 : vector<8x1xf32>
    %21 = vector.broadcast %20 : vector<8x1xf32> to vector<8x128xf32>
    %22 = arith.subf %4, %21 : vector<8x128xf32>
    %23 = vector.broadcast %12 : vector<1x128xf32> to vector<8x128xf32>
    %24 = arith.mulf %22, %23 : vector<8x128xf32>
    %25 = arith.mulf %24, %24 : vector<8x128xf32>
    %cst_8 = arith.constant dense<0.000000e+00> : vector<8xf32>
    %26 = vector.multi_reduction <add>, %25, %cst_8 [1] : vector<8x128xf32> to vector<8xf32>
    %27 = vector.shape_cast %26 : vector<8xf32> to vector<8x1xf32>
    %c0_9 = arith.constant 0 : index
    %c0_10 = arith.constant 0 : index
    %c0_11 = arith.constant 0 : index
    %c0_12 = arith.constant 0 : index
    %28 = vector.load %arg4[%c0_9, %c0_10, %c0_11, %c0_12] : memref<1x1x8x1xf32, #tpu.memory_space<vmem>>, vector<1x1x8x1xf32>
    %29 = vector.shape_cast %28 : vector<1x1x8x1xf32> to vector<8x1xf32>
    %30 = vector.shape_cast %18 : vector<8x1xf32> to vector<1x1x8x1xf32>
    tpu.vector_store %arg4[%c0_9, %c0_10, %c0_11, %c0_12], %30 {strides = array<i32>} : memref<1x1x8x1xf32, #tpu.memory_space<vmem>>, vector<1x1x8x1xf32>,
    %c0_13 = arith.constant 0 : index
    %c0_14 = arith.constant 0 : index
    %c0_15 = arith.constant 0 : index
    %c0_16 = arith.constant 0 : index
    %31 = vector.load %arg5[%c0_13, %c0_14, %c0_15, %c0_16] : memref<1x1x8x1xf32, #tpu.memory_space<vmem>>, vector<1x1x8x1xf32>
    %32 = vector.shape_cast %31 : vector<1x1x8x1xf32> to vector<8x1xf32>
    %33 = vector.shape_cast %27 : vector<8x1xf32> to vector<1x1x8x1xf32>
    tpu.vector_store %arg5[%c0_13, %c0_14, %c0_15, %c0_16], %33 {strides = array<i32>} : memref<1x1x8x1xf32, #tpu.memory_space<vmem>>, vector<1x1x8x1xf32>,
    return
  }
  func.func @transform_0(%arg0: i32, %arg1: i32) -> (i32, i32) {
    %c0_i32 = arith.constant 0 : i32
    %c0_i32_0 = arith.constant 0 : i32
    %c0_i32_1 = arith.constant 0 : i32
    return %c0_i32, %c0_i32_0 : i32, i32
  }
  func.func @transform_1(%arg0: i32, %arg1: i32) -> (i32, i32, i32) {
    %c0_i32 = arith.constant 0 : i32
    %c0_i32_0 = arith.constant 0 : i32
    return %arg0, %c0_i32, %arg1 : i32, i32, i32
  }
  func.func @transform_2(%arg0: i32, %arg1: i32) -> (i32, i32, i32, i32) {
    %c0_i32 = arith.constant 0 : i32
    %c0_i32_0 = arith.constant 0 : i32
    %c0_i32_1 = arith.constant 0 : i32
    return %arg0, %arg1, %c0_i32, %c0_i32_0 : i32, i32, i32, i32
  }
  func.func @transform_3(%arg0: i32, %arg1: i32) -> (i32, i32, i32, i32) {
    %c0_i32 = arith.constant 0 : i32
    %c0_i32_0 = arith.constant 0 : i32
    %c0_i32_1 = arith.constant 0 : i32
    return %arg0, %arg1, %c0_i32, %c0_i32_0 : i32, i32, i32, i32
  }
}

module attributes {stable_mosaic.version = 11 : i64} {
  func.func @_apply_kernel(%arg0: i32, %arg1: i32, %arg2: memref<8x8xbf16, #tpu.memory_space<vmem>>, %arg3: memref<1x8x128xf32, #tpu.memory_space<vmem>>, %arg4: memref<8x128xf32, #tpu.memory_space<vmem>>, %arg5: memref<8x128xf32, #tpu.memory_space<vmem>>, %arg6: memref<1x8x128xf32, #tpu.memory_space<vmem>>) attributes {dimension_semantics = [#tpu.dimension_semantics<parallel>, #tpu.dimension_semantics<parallel>], iteration_bounds = array<i64: 2, 2>, scalar_prefetch = 0 : i64, scratch_operands = 0 : i64, tpu.core_type = #tpu.core_type<tc>, window_params = [{pipeline_mode = #tpu.pipeline_mode<synchronous>, transform_indices = @transform_0, window_bounds = array<i64: 8, 8>}, {transform_indices = @transform_1, window_bounds = array<i64: 1, 8, 128>}, {pipeline_mode = #tpu.pipeline_mode<synchronous>, transform_indices = @transform_2, window_bounds = array<i64: 8, 128>}, {pipeline_mode = #tpu.pipeline_mode<synchronous>, transform_indices = @transform_3, window_bounds = array<i64: 8, 128>}, {transform_indices = @transform_4, window_bounds = array<i64: 1, 8, 128>}]} {
    %c0 = arith.constant 0 : index
    %c0_0 = arith.constant 0 : index
    %0 = vector.load %arg2[%c0, %c0_0] : memref<8x8xbf16, #tpu.memory_space<vmem>>, vector<8x8xbf16>
    %c0_1 = arith.constant 0 : index
    %c0_2 = arith.constant 0 : index
    %c0_3 = arith.constant 0 : index
    %1 = vector.load %arg3[%c0_1, %c0_2, %c0_3] : memref<1x8x128xf32, #tpu.memory_space<vmem>>, vector<1x8x128xf32>
    %2 = vector.shape_cast %1 : vector<1x8x128xf32> to vector<8x128xf32>
    %3 = arith.truncf %2 : vector<8x128xf32> to vector<8x128xbf16>
    %cst = arith.constant dense<0.000000e+00> : vector<8x128xf32>
    %4 = tpu.matmul %0, %3, %cst {dimension_numbers = #tpu.dot_dimension_numbers<[1], [0], [0], [1], [0, 0, 1, 1], [], []>} : vector<8x8xbf16>, vector<8x128xbf16>, vector<8x128xf32> -> vector<8x128xf32>
    %c0_4 = arith.constant 0 : index
    %c0_5 = arith.constant 0 : index
    %5 = vector.load %arg4[%c0_4, %c0_5] : memref<8x128xf32, #tpu.memory_space<vmem>>, vector<8x1xf32>
    %6 = vector.broadcast %5 : vector<8x1xf32> to vector<8x128xf32>
    %7 = arith.mulf %4, %6 : vector<8x128xf32>
    %c0_6 = arith.constant 0 : index
    %c0_7 = arith.constant 0 : index
    %8 = vector.load %arg5[%c0_6, %c0_7] : memref<8x128xf32, #tpu.memory_space<vmem>>, vector<8x1xf32>
    %9 = vector.broadcast %8 : vector<8x1xf32> to vector<8x128xf32>
    %10 = arith.addf %7, %9 : vector<8x128xf32>
    %c0_8 = arith.constant 0 : index
    %c0_9 = arith.constant 0 : index
    %c0_10 = arith.constant 0 : index
    %11 = vector.load %arg6[%c0_8, %c0_9, %c0_10] : memref<1x8x128xf32, #tpu.memory_space<vmem>>, vector<1x8x128xf32>
    %12 = vector.shape_cast %11 : vector<1x8x128xf32> to vector<8x128xf32>
    %13 = vector.shape_cast %10 : vector<8x128xf32> to vector<1x8x128xf32>
    tpu.vector_store %arg6[%c0_8, %c0_9, %c0_10], %13 {strides = array<i32>} : memref<1x8x128xf32, #tpu.memory_space<vmem>>, vector<1x8x128xf32>,
    return
  }
  func.func @transform_0(%arg0: i32, %arg1: i32) -> (i32, i32) {
    %c0_i32 = arith.constant 0 : i32
    %c0_i32_0 = arith.constant 0 : i32
    %c0_i32_1 = arith.constant 0 : i32
    return %c0_i32, %c0_i32_0 : i32, i32
  }
  func.func @transform_1(%arg0: i32, %arg1: i32) -> (i32, i32, i32) {
    %c0_i32 = arith.constant 0 : i32
    %c0_i32_0 = arith.constant 0 : i32
    return %arg0, %c0_i32, %arg1 : i32, i32, i32
  }
  func.func @transform_2(%arg0: i32, %arg1: i32) -> (i32, i32) {
    %c0_i32 = arith.constant 0 : i32
    %c0_i32_0 = arith.constant 0 : i32
    %c0_i32_1 = arith.constant 0 : i32
    return %c0_i32, %c0_i32_0 : i32, i32
  }
  func.func @transform_3(%arg0: i32, %arg1: i32) -> (i32, i32) {
    %c0_i32 = arith.constant 0 : i32
    %c0_i32_0 = arith.constant 0 : i32
    %c0_i32_1 = arith.constant 0 : i32
    return %c0_i32, %c0_i32_0 : i32, i32
  }
  func.func @transform_4(%arg0: i32, %arg1: i32) -> (i32, i32, i32) {
    %c0_i32 = arith.constant 0 : i32
    %c0_i32_0 = arith.constant 0 : i32
    return %arg0, %c0_i32, %arg1 : i32, i32, i32
  }
}

</mosaic_0001>

<bundles_post_ra>
// kernel: linear_block_forward.2
= control target key start
LH: loop header
LB: loop body
LE: loop exit
PB: predicated region body
PF: predicated region fallthrough
CT: control target
= control target key end

     0   :  { %s563_s12 = smov 0   ;;  %s565_s13 = smov 0   ;;  %s630_s0 = inlined_call_operand.vmem [shape: bf16[8,8], index: 0, kind: input, shape index: {}]   ;;  %s631_s1 = inlined_call_operand.vmem [shape: f32[2,8,256], index: 1, kind: input, shape index: {}]   ;;  %s632_s2 = inlined_call_operand.vmem [shape: f32[2,2,8,1], index: 2, kind: output, shape index: {0}]   ;;  %s633_s3 = inlined_call_operand.vmem [shape: f32[2,2,8,1], index: 3, kind: output, shape index: {1}]  }
   0x1   :  { %s567_s14 = smov 0   ;;  %s569_s15 = smov 0  }
   0x2   :  { %s571_s16 = smov 0  }
   0x3 LB: > { %s23_s17 = sadd.s32 1, %s531_s14  ;;  %s26_s18 = sadd.s32 1, %s535_s15  ;;  %s539_s16 = sphi %s571_s16, %s14_s16   ;;  %s535_s15 = sphi %s569_s15, %s637_s15   ;;  %s531_s14 = sphi %s567_s14, %s636_s14   ;;  %s527_s13 = sphi %s565_s13, %s635_s13   ;;  %s523_s12 = sphi %s563_s12, %s634_s12  }
   0x4   : > { %p24_p0 = scmp.ge.s32.totalorder %s23_s17, 2  ;;  %p437_p1 = scmp.ge.s32.totalorder %s539_s16, 1 }
   0x5   : > { %p161_p2 = scmp.lt.s32.totalorder %s539_s16, 5 }
   0x6   : > { %s639_s17 = smov (%p24_p0, %s23_s17), 0  ;;  %s641_s18 = smov (!%p24_p0, %s26_s18), %s535_s15 }
   0x7   : > { %p162_p3 = pnand %p437_p1, %p161_p2  ;;  %p28_p4 = scmp.ge.s32.totalorder %s641_s18, 2 }
   0x8   : > { %p199_p5 = scmp.lt.s32.totalorder (!%p162_p3), %s527_s13, 1  ;;  %p201_p6 = scmp.lt.s32.totalorder (!%p162_p3), %s523_s12, 1  ;;  %v541_v0 = vmov (!%p162_p3), 0.0   ;;  %vm542_vm0 = vmmov (!%p162_p3), 0   ;;  %vm231_vm1 = vcmask (!%p162_p3), 1043456   ;;  %vm227_vm2 = vcmask (!%p162_p3), 64512  }
   0x9   : > { %s643_s18 = smov (%p28_p4, %s641_s18), 0  ;;  %165 = sbr.rel (%p162_p3) target bundleno = 534 (0x216), region = 28 }
   0xa   : > { %451 = vmatprep.subr.bf16.mxu0 (!%p162_p3), %v541_v0  ;;  %453 = vmatprep.mubr.msk.bf16.mxu0 (!%p162_p3), %vm542_vm0, %v541_v0  ;;  %v224_v4 = vld [vmem:[%s630_s0] sm:$0xf] (!%p162_p3)  ;;  %s445_s28 = sshll.u32 (!%p162_p3), %s523_s12, 7  ;;  %v275_v10 = vlaneseq (!%p162_p3)  ;;  %vm297_vm3 = vcmask (!%p162_p3), 7168  }
   0xb   : > { %s283_s29 = ssub.s32 (!%p162_p3), 256, %s445_s28  ;;  %v278_v12 = vstv (!%p162_p3), %s445_s28 }
   0xc   : > { %p284_p7 = scmp.lt.s32.totalorder (!%p162_p3), %s283_s29, 128  ;;  %v276_v11 = vand.u32 (!%p162_p3), 127, %v275_v10 }
   0xe   : > { %v279_v13 = vadd.s32 (!%p162_p3), %v278_v12, %v276_v11 }
  0x10   : > { %s645_s13 = smov (!%p199_p5, %s527_s13), 1  ;;  %s647_s29 = smov (!%p284_p7, %s283_s29), 128  ;;  %vm280_vm4 = vcmp.lt.s32.totalorder %v279_v13, 256 }
  0x11   : > { %s202_s19 = scalar_select %p201_p6, %s523_s12, 1  ;;  %v446_v17 = vsel %vm280_vm4, 1.0, %v541_v0 }
  0x12   : > { %s438_s20 = sshll.u32 %s645_s13, 1  ;;  %s286_s30 = scvt.s32.f32 %s647_s29 }
  0x13   : > { %s204_s21 = sadd.s32 %s438_s20, %s202_s19 }
  0x14   : > { %s597_s22 = sshll.u32 %s204_s21, 3  ;;  %v289_v9 = vstv %s286_s30 }
  0x15   : > { %s206_s25 = scalar_lea.vmem %s631_s1, %s597_s22  ;;  %499 = vrcp.f32 %v289_v9  ;;  %s214_s6 = scalar_lea.vmem %s632_s2, %s597_s22 }
  0x16   : > { %v225_v1 = vld [vmem:[%s206_s25] sm:$0xff]  ;;  %s222_s9 = scalar_lea.vmem %s633_s3, %s597_s22 }
  0x17   : > { %v226_v2 = vpack.c.bf16 %v225_v1, %v225_v1 }
  0x19   : > { %v233_v3 = vsel %vm231_vm1, %v226_v2, 0 }
  0x1a   : > { %452 = vmatpush3.bf16.msra.mxu0 %v233_v3 }
  0x1d   : > { %454 = vmatmul.mubr.msk.bf16.vlgmr.msra.gmra.mrb[0].mxu0 %vm227_vm2, %v224_v4 }
  0x1f   : > { %v500_v14 = vpop.eup %499 }
  0xf0   : > { %v269_v5 = vpop.f32.mrb[0].mxu0 }
  0xf1   : > { %287 = vadd.xlane.f32.xlu0 %v269_v5  ;;  %v455_v6 = vpop.f32.mrb[1].mxu0 }
  0xf2   : > { %v272_v7 = vpop.f32.mrb[2].mxu0 }
  0xf3   : > { %v456_v8 = vpop.f32.mrb[3].mxu0 }
 0x17e   : > { %v288_v15 = vpop.xlane.xlu0 %287 }
 0x17f   : > { %v291_v16 = vmul.f32 %v500_v14, %v288_v15  ;;  %298 = vst.msk [vmem:[%s214_s6] sm:$0xff] %vm297_vm3, %v288_v15 }
 0x181   : > { %v292_v18 = vsub.f32 %v269_v5, %v291_v16 }
 0x183   : > { %v293_v19 = vmul.f32 %v446_v17, %v292_v18 }
 0x185   : > { %v294_v20 = vmul.f32 %v293_v19, %v293_v19 }
 0x187   : > { %295 = vadd.xlane.f32.xlu0 %v294_v20 }
 0x214   : > { %v296_v21 = vpop.xlane.xlu0 %295 }
 0x215   : > { %299 = vst.msk [vmem:[%s222_s9] sm:$0xff] %vm297_vm3, %v296_v21 }
 0x216 PF: > { %s14_s16 = sadd.s32 1, %s539_s16   ;;  %s634_s12 = smov %s531_s14 }
 0x217   : > { %p11_p8 = scmp.ge.s32.totalorder %s14_s16, 6   ;;  %s635_s13 = smov %s535_s15 }
 0x218   : > { %s636_s14 = smov %s639_s17  ;;  %s637_s15 = smov %s643_s18 }
 0x219   :  { %13 = sbr.rel (!%p11_p8) target bundleno = 3 (0x3), region = 70 }

// kernel: linear_block_forward.3
= control target key start
LH: loop header
LB: loop body
LE: loop exit
PB: predicated region body
PF: predicated region fallthrough
CT: control target
= control target key end

     0   :  { %s514_s15 = smov 0   ;;  %s516_s16 = smov 0   ;;  %s574_s0 = inlined_call_operand.vmem [shape: bf16[8,8], index: 0, kind: input, shape index: {}]   ;;  %s575_s1 = inlined_call_operand.vmem [shape: f32[2,8,256], index: 1, kind: input, shape index: {}]   ;;  %s576_s2 = inlined_call_operand.vmem [shape: f32[8,128], index: 2, kind: input, shape index: {}]   ;;  %s577_s3 = inlined_call_operand.vmem [shape: f32[8,128], index: 3, kind: input, shape index: {}]   ;;  %s578_s4 = inlined_call_operand.vmem [shape: f32[2,8,256], index: 4, kind: output, shape index: {}]  }
   0x1   :  { %s518_s17 = smov 0   ;;  %s520_s18 = smov 0  }
   0x2   :  { %s522_s19 = smov 0  }
   0x3 LB: > { %s23_s20 = sadd.s32 1, %s476_s17  ;;  %s26_s21 = sadd.s32 1, %s480_s18  ;;  %s484_s19 = sphi %s522_s19, %s14_s19   ;;  %s480_s18 = sphi %s520_s18, %s582_s18   ;;  %s476_s17 = sphi %s518_s17, %s581_s17   ;;  %s472_s16 = sphi %s516_s16, %s580_s16   ;;  %s468_s15 = sphi %s514_s15, %s579_s15  }
   0x4   : > { %p24_p0 = scmp.ge.s32.totalorder %s23_s20, 2  ;;  %p386_p1 = scmp.ge.s32.totalorder %s484_s19, 1 }
   0x5   : > { %p181_p2 = scmp.lt.s32.totalorder %s484_s19, 5 }
   0x6   : > { %s584_s20 = smov (%p24_p0, %s23_s20), 0  ;;  %s586_s21 = smov (!%p24_p0, %s26_s21), %s480_s18 }
   0x7   : > { %p182_p3 = pnand %p386_p1, %p181_p2  ;;  %p28_p4 = scmp.ge.s32.totalorder %s586_s21, 2 }
   0x8   : > { %p213_p5 = scmp.lt.s32.totalorder (!%p182_p3), %s472_s16, 1  ;;  %p215_p6 = scmp.lt.s32.totalorder (!%p182_p3), %s468_s15, 1  ;;  %v486_v0 = vmov (!%p182_p3), 0.0   ;;  %vm487_vm0 = vmmov (!%p182_p3), 0   ;;  %v281_v1 = vld [vmem:[%s576_s2] sm:$0xff] (!%p182_p3)  ;;  %v488_v2 = vmov (!%p182_p3), 0  }
   0x9   : > { %s588_s21 = smov (%p28_p4, %s586_s21), 0  ;;  %185 = sbr.rel (%p182_p3) target bundleno = 245 (0xf5), region = 36 }
   0xa   : > { %396 = vmatprep.subr.bf16.mxu0 (!%p182_p3), %v486_v0  ;;  %398 = vmatprep.mubr.msk.bf16.mxu0 (!%p182_p3), %vm487_vm0, %v486_v0  ;;  %v288_v3 = vld [vmem:[%s577_s3] sm:$0xff] (!%p182_p3)  ;;  %vm237_vm1 = vcmask (!%p182_p3), 1043456   ;;  %vm233_vm2 = vcmask (!%p182_p3), 64512  }
   0xb   : > { %445 = vset.pattern.permute.xlu0 (!%p182_p3), %v488_v2  ;;  %v230_v7 = vld [vmem:[%s574_s0] sm:$0xf] (!%p182_p3) }
   0xc   : > { %284 = vperm.xlu0 (!%p182_p3), %445, %v281_v1  }
  0x10   : > { %s590_s16 = smov (!%p213_p5, %s472_s16), 1  ;;  %s592_s15 = smov (!%p215_p6, %s468_s15), 1  ;;  %291 = vperm.xlu0 %445, %v288_v3  }
  0x11   : > { %s387_s24 = sshll.u32 %s590_s16, 1 }
  0x12   : > { %s218_s27 = sadd.s32 %s387_s24, %s592_s15 }
  0x13   : > { %s388_s28 = sshll.u32 %s218_s27, 3 }
  0x14   : > { %s220_s5 = scalar_lea.vmem %s575_s1, %s388_s28  ;;  %s228_s10 = scalar_lea.vmem %s578_s4, %s388_s28 }
  0x15   : > { %v231_v4 = vld [vmem:[%s220_s5] sm:$0xff] }
  0x16   : > { %v232_v5 = vpack.c.bf16 %v231_v4, %v231_v4 }
  0x18   : > { %v239_v6 = vsel %vm237_vm1, %v232_v5, 0 }
  0x19   : > { %397 = vmatpush3.bf16.msra.mxu0 %v239_v6 }
  0x1c   : > { %399 = vmatmul.mubr.msk.bf16.vlgmr.msra.gmra.mrb[0].mxu0 %vm233_vm2, %v230_v7 }
  0x8b   : > { %v285_v8 = vpop.permute.xlu0 %284 }
  0x8f   : > { %v292_v12 = vpop.permute.xlu0 %291 }
  0xef   : > { %v275_v9 = vpop.f32.mrb[0].mxu0 }
  0xf0   : > { %v287_v10 = vmul.f32 %v285_v8, %v275_v9  ;;  %v400_v11 = vpop.f32.mrb[1].mxu0 }
  0xf1   : > { %v278_v13 = vpop.f32.mrb[2].mxu0 }
  0xf2   : > { %v294_v14 = vadd.f32 %v292_v12, %v287_v10  ;;  %v401_v15 = vpop.f32.mrb[3].mxu0 }
  0xf4   : > { %295 = vst [vmem:[%s228_s10] sm:$0xff] %v294_v14 }
  0xf5 PF: > { %s14_s19 = sadd.s32 1, %s484_s19   ;;  %s579_s15 = smov %s476_s17 }
  0xf6   : > { %p11_p7 = scmp.ge.s32.totalorder %s14_s19, 6   ;;  %s580_s16 = smov %s480_s18 }
  0xf7   : > { %s581_s17 = smov %s584_s20  ;;  %s582_s18 = smov %s588_s21 }
  0xf8   :  { %13 = sbr.rel (!%p11_p7) target bundleno = 3 (0x3), region = 66 }

</bundles_post_ra>
